<compile_context>
chip_gen: v6e
topology: v6e:2x2x1
jax: 0.10.0
libtpu: 0.0.40
codegen_flags: <defaults>
</compile_context>

<pallas_src>
import jax
import jax.numpy as jnp
from jax.experimental import pallas as pl
from jax.experimental.pallas import tpu as pltpu


F_IN = 64                  # input feature dim (f_in)
H1, H2, H3 = 100, 70, 40   # hidden dims from the PyTorch module
D = 128                    # lane-padded width for every layer (100/70/40/64 -> 128)
N_LAYERS = 6
BATCH = 256                # demo batch: tile=128 -> grid=(2,) so both v7x TCs get work


def autoencoder_kernel(x_ref, w_ref, b_ref, o_ref):
    """x_ref: (TB, D) f32; w_ref: (6, D, D) bf16; b_ref: (6, 1, D) f32; o_ref: (TB, D) f32."""

    def linear(h, l):
        # bf16 operands on the MXU, f32 accumulation; bias add stays f32 on the VPU.
        return jnp.dot(h.astype(jnp.bfloat16), w_ref[l],
                       preferred_element_type=jnp.float32) + b_ref[l]

    h = x_ref[...]

    # ---- encoder ----
    h = jnp.tanh(linear(h, 0))
    # TODO(synk): Dropout(0.2) is identity here (eval-mode); use pltpu.prng_* for train mode.
    h = jnp.tanh(linear(h, 1))
    z = linear(h, 2)

    # ---- decoder ----
    d = jnp.maximum(z, 0.0)            # ReLU(inplace=True)
    d = jnp.tanh(linear(d, 3))
    d = jnp.tanh(linear(d, 4))
    o_ref[...] = linear(d, 5).astype(o_ref.dtype)


def _round_up(n, m):
    return (n + m - 1) // m * m


def _pick_batch_tile(b):
    """Fill the MXU M dimension; keep >= 2 grid steps when the batch allows (v7x megacore)."""
    if b >= 512:
        return 256           # one full 256-row MXU pass per step (v6e/v7x sweet spot)
    if b >= 256:
        return 128
    return _round_up(b, 8)   # tiny batch: single tile, padded to the sublane granule


def init_linear(key, fan_in, fan_out):
    """PyTorch nn.Linear default init: U(-1/sqrt(fan_in), 1/sqrt(fan_in)).
    Weight stored transposed as (fan_in, fan_out) so the kernel does x @ W."""
    kw, kb = jax.random.split(key)
    bound = 1.0 / jnp.sqrt(jnp.float32(fan_in))
    w = jax.random.uniform(kw, (fan_in, fan_out), jnp.float32, -bound, bound)
    b = jax.random.uniform(kb, (fan_out,), jnp.float32, -bound, bound)
    return w, b


def make_params(key, f_in):
    dims = [(f_in, H1), (H1, H2), (H2, H3), (H3, H3), (H3, H2), (H2, f_in)]
    keys = jax.random.split(key, len(dims))
    return [init_linear(k, fi, fo) for k, (fi, fo) in zip(keys, dims)]


def pack_params(params):
    """Zero-pad every layer to (D, D)/(1, D), stack into two resident buffers.
    Zero pad rows/cols are annihilated by zero inputs, so numerics are unchanged."""
    ws, bs = [], []
    for w, b in params:
        fi, fo = w.shape
        ws.append(jnp.zeros((D, D), jnp.float32).at[:fi, :fo].set(w))
        bs.append(jnp.zeros((1, D), jnp.float32).at[0, :fo].set(b))
    w_packed = jnp.stack(ws).astype(jnp.bfloat16)   # (6, D, D) bf16 — MXU-native operand
    b_packed = jnp.stack(bs)                        # (6, 1, D) f32
    return w_packed, b_packed


def autoencoder_forward(x, w_packed, b_packed):
    B, f_in = x.shape
    assert f_in <= D, "feature dim must fit one 128-lane tile"
    tb = _pick_batch_tile(B)
    bp = _round_up(B, tb)
    grid = (bp // tb,)

    # Lane-dense (bp, 128) input slab: unmasked vector loads; zero pad lanes are harmless.
    xp = jnp.pad(x, ((0, bp - B), (0, D - f_in)))

    cost = pl.CostEstimate(
        flops=2 * bp * N_LAYERS * D * D,
        transcendentals=4 * bp * D,                              # four tanh layers
        bytes_accessed=2 * bp * D * 4 + w_packed.size * 2 + b_packed.size * 4,
    )

    out = pl.pallas_call(
        autoencoder_kernel,
        out_shape=jax.ShapeDtypeStruct((bp, D), jnp.float32),
        grid_spec=pltpu.PrefetchScalarGridSpec(
            num_scalar_prefetch=0,
            grid=grid,
            in_specs=[
                # batch tile of x
                pl.BlockSpec((tb, D), lambda i: (i, 0)),
                # packed weights / biases: constant index_map -> DMA'd once, VMEM-resident
                # across the whole batch grid (Pallas skips re-fetch of unchanged blocks).
                pl.BlockSpec((N_LAYERS, D, D), lambda i: (0, 0, 0)),
                pl.BlockSpec((N_LAYERS, 1, D), lambda i: (0, 0, 0)),
            ],
            out_specs=pl.BlockSpec((tb, D), lambda i: (i, 0)),
        ),
        compiler_params=pltpu.CompilerParams(
            dimension_semantics=("parallel",)),   # batch axis shardable across TensorCores
        cost_estimate=cost,
    )(xp, w_packed, b_packed)

    return out[:B, :f_in]


def reference_forward(x, params):
    """Pure-JAX reference of the PyTorch forward (eval mode). Mirrors the kernel's
    bf16 matmul operands with f32 accumulation so the check isolates structural bugs
    from the (intentional, ~0.2%) bf16 quantization of the matmul inputs."""
    def lin(h, w, b):
        return jnp.dot(h.astype(jnp.bfloat16), w.astype(jnp.bfloat16),
                       preferred_element_type=jnp.float32) + b

    (w1, b1), (w2, b2), (w3, b3), (w4, b4), (w5, b5), (w6, b6) = params
    h = jnp.tanh(lin(x, w1, b1))
    h = jnp.tanh(lin(h, w2, b2))
    z = lin(h, w3, b3)
    d = jnp.maximum(z, 0.0)
    d = jnp.tanh(lin(d, w4, b4))
    d = jnp.tanh(lin(d, w5, b5))
    return lin(d, w6, b6)


if __name__ == "__main__":
    key = jax.random.PRNGKey(0)
    kx, kp = jax.random.split(key)
    x = jax.random.normal(kx, (BATCH, F_IN), jnp.float32)
    params = make_params(kp, F_IN)
    w_packed, b_packed = pack_params(params)

    out = autoencoder_forward(x, w_packed, b_packed)
    out = jax.block_until_ready(out)

    ref = reference_forward(x, params)
    assert out.shape == (BATCH, F_IN)
    # Tolerance covers tiny tanh/accumulation-order differences at bf16 rounding boundaries.
    assert jnp.allclose(out, ref, atol=1e-2, rtol=1e-2), "mismatch vs reference"
    print("KERNEL_OK")
</pallas_src>

<mosaic_0001>
module attributes {stable_mosaic.version = 11 : i64} {
  func.func @autoencoder_kernel(%arg0: i32, %arg1: memref<128x128xf32, #tpu.memory_space<vmem>>, %arg2: memref<6x128x128xbf16, #tpu.memory_space<vmem>>, %arg3: memref<6x1x128xf32, #tpu.memory_space<vmem>>, %arg4: memref<128x128xf32, #tpu.memory_space<vmem>>) attributes {dimension_semantics = [#tpu.dimension_semantics<parallel>], iteration_bounds = array<i64: 2>, scalar_prefetch = 0 : i64, scratch_operands = 0 : i64, tpu.core_type = #tpu.core_type<tc>, window_params = [{transform_indices = @transform_0, window_bounds = array<i64: 128, 128>}, {pipeline_mode = #tpu.pipeline_mode<synchronous>, transform_indices = @transform_1, window_bounds = array<i64: 6, 128, 128>}, {pipeline_mode = #tpu.pipeline_mode<synchronous>, transform_indices = @transform_2, window_bounds = array<i64: 6, 1, 128>}, {transform_indices = @transform_3, window_bounds = array<i64: 128, 128>}]} {
    %c0 = arith.constant 0 : index
    %c0_0 = arith.constant 0 : index
    %0 = vector.load %arg1[%c0, %c0_0] : memref<128x128xf32, #tpu.memory_space<vmem>>, vector<128x128xf32>
    %1 = arith.truncf %0 : vector<128x128xf32> to vector<128x128xbf16>
    %c0_1 = arith.constant 0 : index
    %c0_2 = arith.constant 0 : index
    %c0_3 = arith.constant 0 : index
    %2 = vector.load %arg2[%c0_1, %c0_2, %c0_3] : memref<6x128x128xbf16, #tpu.memory_space<vmem>>, vector<1x128x128xbf16>
    %3 = vector.shape_cast %2 : vector<1x128x128xbf16> to vector<128x128xbf16>
    %cst = arith.constant dense<0.000000e+00> : vector<128x128xf32>
    %4 = tpu.matmul %1, %3, %cst {dimension_numbers = #tpu.dot_dimension_numbers<[1], [0], [0], [1], [0, 0, 1, 1], [], []>} : vector<128x128xbf16>, vector<128x128xbf16>, vector<128x128xf32> -> vector<128x128xf32>
    %c0_4 = arith.constant 0 : index
    %c0_5 = arith.constant 0 : index
    %c0_6 = arith.constant 0 : index
    %5 = vector.load %arg3[%c0_4, %c0_5, %c0_6] : memref<6x1x128xf32, #tpu.memory_space<vmem>>, vector<1x1x128xf32>
    %6 = vector.shape_cast %5 : vector<1x1x128xf32> to vector<1x128xf32>
    %7 = vector.broadcast %6 : vector<1x128xf32> to vector<128x128xf32>
    %8 = arith.addf %4, %7 : vector<128x128xf32>
    %9 = math.tanh %8 : vector<128x128xf32>
    %10 = arith.truncf %9 : vector<128x128xf32> to vector<128x128xbf16>
    %c1 = arith.constant 1 : index
    %c0_7 = arith.constant 0 : index
    %c0_8 = arith.constant 0 : index
    %11 = vector.load %arg2[%c1, %c0_7, %c0_8] : memref<6x128x128xbf16, #tpu.memory_space<vmem>>, vector<1x128x128xbf16>
    %12 = vector.shape_cast %11 : vector<1x128x128xbf16> to vector<128x128xbf16>
    %cst_9 = arith.constant dense<0.000000e+00> : vector<128x128xf32>
    %13 = tpu.matmul %10, %12, %cst_9 {dimension_numbers = #tpu.dot_dimension_numbers<[1], [0], [0], [1], [0, 0, 1, 1], [], []>} : vector<128x128xbf16>, vector<128x128xbf16>, vector<128x128xf32> -> vector<128x128xf32>
    %c1_10 = arith.constant 1 : index
    %c0_11 = arith.constant 0 : index
    %c0_12 = arith.constant 0 : index
    %14 = vector.load %arg3[%c1_10, %c0_11, %c0_12] : memref<6x1x128xf32, #tpu.memory_space<vmem>>, vector<1x1x128xf32>
    %15 = vector.shape_cast %14 : vector<1x1x128xf32> to vector<1x128xf32>
    %16 = vector.broadcast %15 : vector<1x128xf32> to vector<128x128xf32>
    %17 = arith.addf %13, %16 : vector<128x128xf32>
    %18 = math.tanh %17 : vector<128x128xf32>
    %19 = arith.truncf %18 : vector<128x128xf32> to vector<128x128xbf16>
    %c2 = arith.constant 2 : index
    %c0_13 = arith.constant 0 : index
    %c0_14 = arith.constant 0 : index
    %20 = vector.load %arg2[%c2, %c0_13, %c0_14] : memref<6x128x128xbf16, #tpu.memory_space<vmem>>, vector<1x128x128xbf16>
    %21 = vector.shape_cast %20 : vector<1x128x128xbf16> to vector<128x128xbf16>
    %cst_15 = arith.constant dense<0.000000e+00> : vector<128x128xf32>
    %22 = tpu.matmul %19, %21, %cst_15 {dimension_numbers = #tpu.dot_dimension_numbers<[1], [0], [0], [1], [0, 0, 1, 1], [], []>} : vector<128x128xbf16>, vector<128x128xbf16>, vector<128x128xf32> -> vector<128x128xf32>
    %c2_16 = arith.constant 2 : index
    %c0_17 = arith.constant 0 : index
    %c0_18 = arith.constant 0 : index
    %23 = vector.load %arg3[%c2_16, %c0_17, %c0_18] : memref<6x1x128xf32, #tpu.memory_space<vmem>>, vector<1x1x128xf32>
    %24 = vector.shape_cast %23 : vector<1x1x128xf32> to vector<1x128xf32>
    %25 = vector.broadcast %24 : vector<1x128xf32> to vector<128x128xf32>
    %26 = arith.addf %22, %25 : vector<128x128xf32>
    %cst_19 = arith.constant 0.000000e+00 : f32
    %27 = vector.broadcast %cst_19 : f32 to vector<128x128xf32>
    %28 = arith.maximumf %26, %27 : vector<128x128xf32>
    %29 = arith.truncf %28 : vector<128x128xf32> to vector<128x128xbf16>
    %c3 = arith.constant 3 : index
    %c0_20 = arith.constant 0 : index
    %c0_21 = arith.constant 0 : index
    %30 = vector.load %arg2[%c3, %c0_20, %c0_21] : memref<6x128x128xbf16, #tpu.memory_space<vmem>>, vector<1x128x128xbf16>
    %31 = vector.shape_cast %30 : vector<1x128x128xbf16> to vector<128x128xbf16>
    %cst_22 = arith.constant dense<0.000000e+00> : vector<128x128xf32>
    %32 = tpu.matmul %29, %31, %cst_22 {dimension_numbers = #tpu.dot_dimension_numbers<[1], [0], [0], [1], [0, 0, 1, 1], [], []>} : vector<128x128xbf16>, vector<128x128xbf16>, vector<128x128xf32> -> vector<128x128xf32>
    %c3_23 = arith.constant 3 : index
    %c0_24 = arith.constant 0 : index
    %c0_25 = arith.constant 0 : index
    %33 = vector.load %arg3[%c3_23, %c0_24, %c0_25] : memref<6x1x128xf32, #tpu.memory_space<vmem>>, vector<1x1x128xf32>
    %34 = vector.shape_cast %33 : vector<1x1x128xf32> to vector<1x128xf32>
    %35 = vector.broadcast %34 : vector<1x128xf32> to vector<128x128xf32>
    %36 = arith.addf %32, %35 : vector<128x128xf32>
    %37 = math.tanh %36 : vector<128x128xf32>
    %38 = arith.truncf %37 : vector<128x128xf32> to vector<128x128xbf16>
    %c4 = arith.constant 4 : index
    %c0_26 = arith.constant 0 : index
    %c0_27 = arith.constant 0 : index
    %39 = vector.load %arg2[%c4, %c0_26, %c0_27] : memref<6x128x128xbf16, #tpu.memory_space<vmem>>, vector<1x128x128xbf16>
    %40 = vector.shape_cast %39 : vector<1x128x128xbf16> to vector<128x128xbf16>
    %cst_28 = arith.constant dense<0.000000e+00> : vector<128x128xf32>
    %41 = tpu.matmul %38, %40, %cst_28 {dimension_numbers = #tpu.dot_dimension_numbers<[1], [0], [0], [1], [0, 0, 1, 1], [], []>} : vector<128x128xbf16>, vector<128x128xbf16>, vector<128x128xf32> -> vector<128x128xf32>
    %c4_29 = arith.constant 4 : index
    %c0_30 = arith.constant 0 : index
    %c0_31 = arith.constant 0 : index
    %42 = vector.load %arg3[%c4_29, %c0_30, %c0_31] : memref<6x1x128xf32, #tpu.memory_space<vmem>>, vector<1x1x128xf32>
    %43 = vector.shape_cast %42 : vector<1x1x128xf32> to vector<1x128xf32>
    %44 = vector.broadcast %43 : vector<1x128xf32> to vector<128x128xf32>
    %45 = arith.addf %41, %44 : vector<128x128xf32>
    %46 = math.tanh %45 : vector<128x128xf32>
    %47 = arith.truncf %46 : vector<128x128xf32> to vector<128x128xbf16>
    %c5 = arith.constant 5 : index
    %c0_32 = arith.constant 0 : index
    %c0_33 = arith.constant 0 : index
    %48 = vector.load %arg2[%c5, %c0_32, %c0_33] : memref<6x128x128xbf16, #tpu.memory_space<vmem>>, vector<1x128x128xbf16>
    %49 = vector.shape_cast %48 : vector<1x128x128xbf16> to vector<128x128xbf16>
    %cst_34 = arith.constant dense<0.000000e+00> : vector<128x128xf32>
    %50 = tpu.matmul %47, %49, %cst_34 {dimension_numbers = #tpu.dot_dimension_numbers<[1], [0], [0], [1], [0, 0, 1, 1], [], []>} : vector<128x128xbf16>, vector<128x128xbf16>, vector<128x128xf32> -> vector<128x128xf32>
    %c5_35 = arith.constant 5 : index
    %c0_36 = arith.constant 0 : index
    %c0_37 = arith.constant 0 : index
    %51 = vector.load %arg3[%c5_35, %c0_36, %c0_37] : memref<6x1x128xf32, #tpu.memory_space<vmem>>, vector<1x1x128xf32>
    %52 = vector.shape_cast %51 : vector<1x1x128xf32> to vector<1x128xf32>
    %53 = vector.broadcast %52 : vector<1x128xf32> to vector<128x128xf32>
    %54 = arith.addf %50, %53 : vector<128x128xf32>
    %c0_38 = arith.constant 0 : index
    %c0_39 = arith.constant 0 : index
    %55 = vector.load %arg4[%c0_38, %c0_39] : memref<128x128xf32, #tpu.memory_space<vmem>>, vector<128x128xf32>
    tpu.vector_store %arg4[%c0_38, %c0_39], %54 {strides = array<i32>} : memref<128x128xf32, #tpu.memory_space<vmem>>, vector<128x128xf32>,
    return
  }
  func.func @transform_0(%arg0: i32) -> (i32, i32) {
    %c0_i32 = arith.constant 0 : i32
    %c0_i32_0 = arith.constant 0 : i32
    return %arg0, %c0_i32 : i32, i32
  }
  func.func @transform_1(%arg0: i32) -> (i32, i32, i32) {
    %c0_i32 = arith.constant 0 : i32
    %c0_i32_0 = arith.constant 0 : i32
    %c0_i32_1 = arith.constant 0 : i32
    %c0_i32_2 = arith.constant 0 : i32
    return %c0_i32, %c0_i32_0, %c0_i32_1 : i32, i32, i32
  }
  func.func @transform_2(%arg0: i32) -> (i32, i32, i32) {
    %c0_i32 = arith.constant 0 : i32
    %c0_i32_0 = arith.constant 0 : i32
    %c0_i32_1 = arith.constant 0 : i32
    %c0_i32_2 = arith.constant 0 : i32
    return %c0_i32, %c0_i32_0, %c0_i32_1 : i32, i32, i32
  }
  func.func @transform_3(%arg0: i32) -> (i32, i32) {
    %c0_i32 = arith.constant 0 : i32
    %c0_i32_0 = arith.constant 0 : i32
    return %arg0, %c0_i32 : i32, i32
  }
}

</mosaic_0001>

<bundles_post_ra>
// kernel: tpu_custom_call.1
= control target key start
LH: loop header
LB: loop body
LE: loop exit
PB: predicated region body
PF: predicated region fallthrough
CT: control target
= control target key end

     0   :  { %8 = vsyncpa [#allocation3], 0  ;;  %s2529_s0 = inlined_call_operand.hbm [shape: f32[256,128], index: 0, kind: input, shape index: {}]   ;;  %s2530_s1 = inlined_call_operand.hbm [shape: bf16[6,128,128], index: 1, kind: input, shape index: {}]   ;;  %s2531_s2 = inlined_call_operand.hbm [shape: f32[6,1,128], index: 2, kind: input, shape index: {}]   ;;  %s2532_s3 = inlined_call_operand.hbm [shape: f32[256,128], index: 3, kind: output, shape index: {}]  }
   0x1   :  { %10 = vsyncpa [#allocation3 + $0x1], 0 }
   0x2   :  { %11 = vsyncpa [#allocation6], 0 }
   0x3   :  { %12 = vsyncpa [#allocation4], 0 }
   0x4   :  { %14 = vsyncpa [#allocation4 + $0x1], 0  ;;  %s2300_s12 = smov 0   ;;  %s2302_s13 = smov 0  }
   0x5   :  { %s2304_s14 = smov 0   ;;  %s2306_s15 = smov 0  }
   0x6 LB: > { %s2321_s16 = sadd.s32 4294967295, %s2266_s15   ;;  %s1505_s17 = sadd.s32 4294967294, %s2266_s15   ;;  %s2266_s15 = sphi %s2306_s15, %s2554_s15   ;;  %s2262_s14 = sphi %s2304_s14, %s2553_s14   ;;  %s2258_s13 = sphi %s2302_s13, %s2552_s13   ;;  %s2254_s12 = sphi %s2300_s12, %s2551_s12  }
   0x7   : > { %p40_p0 = scmp.ne.s32.totalorder %s2258_s13, %s2254_s12  ;;  %p2533_p1 = scmp.eq.s32.totalorder %s2321_s16, 0 }
   0x8   : > { %p112_p3 = scmp.eq.s32.totalorder %s1505_s17, 1  ;;  %p1506_p5 = scmp.ge.s32.totalorder %s2266_s15, 1 }
   0x9   : > { %p2330_p4 = por %p2533_p1, %p40_p0  ;;  %p119_p7 = scmp.lt.s32.totalorder %s2266_s15, 3 }
   0xa   : > { %p2335_p6 = por %p112_p3, %p40_p0  ;;  %s2268_s21 = smov [#allocation5]  }
   0xb   : > { %s2537_s18 = scalar_select %p2330_p4, 1, 0 }
   0xc   : > { %s2538_s19 = scalar_select %p2335_p6, 1, 0 }
   0xd   : > { %p2340_p8 = pnand %p1506_p5, %p119_p7  ;;  %s131_s22 = sshll.u32 %s2268_s21, 4  ;;  %s132_s22 = int_to_ptr.vmem [resolvable:$true] %s131_s22 }
   0xe   : > { %s2269_s24 = smov [#allocation7]   ;;  %s2129_s26 = scalar_lea.vmem %s132_s22, 6144 }
   0xf   : > { %s2539_s20 = scalar_select %p2340_p8, 1, 0 }
  0x10   : > { %p1879_p9 = pneg %p2340_p8  ;;  %s144_s25 = sshll.u32 %s2269_s24, 4  ;;  %s145_s25 = int_to_ptr.vmem [resolvable:$true] %s144_s25 }
  0x11   : > { %p2130_p13 = scmp.ne.s32.totalorder %s132_s22, %s2129_s26  ;;  %p2137_p5 = scmp.lt.s32.totalorder %s132_s22, %s132_s22 }
  0x12   : > { %p2349_p11 = pnand %p1879_p9, %p2533_p1  ;;  %p2138_p7 = scmp.lt.s32.totalorder %s2129_s26, %s2129_s26 }
  0x14   : > { %p2120_p12 = pneg %p2349_p11  ;;  %p2139_p10 = por %p2138_p7, %p2137_p5 }
  0x16   : > { %p2132_p0 = pnand %p2130_p13, %p2120_p12 }
  0x18   : > { %p2133_p3 = pneg %p2132_p0 }
  0x1a   : > { %p2140_p9 = pnand %p2139_p10, %p2133_p3 }
  0x1c   : > { %2143 = shalt.err (!%p2140_p9)
}
  0x1d   : > { %s2270_s27 = smov 64   ;;  %s2271_s28 = smov 4  }
  0x1e   : > { %1882 = dma.hbm_to_vmem [thread:$0]  (!%p2349_p11), %s2530_s1, 6144, %s132_s22, [#allocation6], %s2270_s27, %s2270_s27, %s2271_s28  }
  0x1f   : > { %s2155_s4 = scalar_lea.vmem %s145_s25, 96  ;;  %p2163_p2 = scmp.lt.s32.totalorder %s145_s25, %s145_s25 }
  0x20   : > { %p2156_p1 = scmp.ne.s32.totalorder %s145_s25, %s2155_s4  ;;  %p2164_p6 = scmp.lt.s32.totalorder %s2155_s4, %s2155_s4 }
  0x22   : > { %p2158_p13 = pnand %p2156_p1, %p2120_p12  ;;  %p2165_p5 = por %p2164_p6, %p2163_p2 }
  0x24   : > { %p2159_p0 = pneg %p2158_p13 }
  0x26   : > { %p2166_p10 = pnand %p2165_p5, %p2159_p0 }
  0x28   : > { %2169 = shalt.err (!%p2166_p10)
}
  0x29   : > { %s2272_s5 = smov 16   ;;  %s2273_s6 = smov 1  }
  0x2a   : > { %1885 = dma.hbm_to_vmem [thread:$0]  (!%p2349_p11), %s2531_s2, 96, %s145_s25, [#allocation6], %s2272_s5, %s2272_s5, %s2273_s6  }
  0x2b   : > { %s2372_s9 = sadd.s32 1, %s2266_s15   ;;  %s27_s11 = sadd.s32 1, %s2262_s14 }
  0x2c   : > { %s24_s10 = ssub.s32 %s2266_s15, %s2372_s9  ;;  %p34_p2 = scmp.ne.s32.totalorder %s2262_s14, %s2258_s13 }
  0x2d   : > { %p25_p1 = scmp.eq.s32.totalorder %s24_s10, 0  ;;  %p35_p6 = scmp.eq.s32.totalorder %s2266_s15, 0 }
  0x2e   : > { %p2541_p3 = scmp.eq.s32.totalorder %s2321_s16, 1  ;;  %p1896_p9 = scmp.lt.s32.totalorder %s2266_s15, 2 }
  0x2f   : > { %s2381_s17 = scalar_select %p25_p1, %s2262_s14, %s27_s11  }
  0x30   : > { %p36_p12 = por %p35_p6, %p34_p2  ;;  %p2385_p7 = por %p2541_p3, %p34_p2 }
  0x31   : > { %s158_s22 = sand.u32 1, %s2262_s14   ;;  %s1577_s24 = sshll.u32 %s2266_s15, 11 }
  0x32   : > { %s2542_s21 = scalar_select %p2385_p7, 1, 0 }
  0x33   : > { %s1510_s23 = sshll.u32 %s158_s22, 7  ;;  %s2395_s27 = scalar_lea.hbm %s2529_s0, %s1577_s24 }
  0x34   : > { %s162_s28 = scalar_lea.vmem [#allocation2], %s1510_s23  ;;  %p2399_p11 = pnand %p1896_p9, %p36_p12 }
  0x35   : > { %s169_s29 = sshll.u32 %s162_s28, 4  ;;  %s2403_s4 = scalar_lea.sflag [#allocation3], %s158_s22  ;;  %s2397_s29 = int_to_ptr.vmem [resolvable:$true] %s169_s29 }
  0x36   : > { %s2170_s5 = scalar_lea.hbm %s2395_s27, 2048  ;;  %p2172_p0 = pneg %p2399_p11 }
  0x37   : > { %p2171_p13 = scmp.ne.s32.totalorder %s2395_s27, %s2170_s5  ;;  %s2175_s8 = scalar_lea.hbm %s2529_s0, 4096 }
  0x38   : > { %p2176_p1 = scmp.lt.s32.totalorder %s2395_s27, %s2529_s0  ;;  %p2177_p2 = scmp.lt.s32.totalorder %s2175_s8, %s2170_s5 }
  0x39   : > { %p2173_p5 = pnand %p2172_p0, %p2171_p13 }
  0x3a   : > { %p2178_p6 = por %p2177_p2, %p2176_p1 }
  0x3b   : > { %p2174_p10 = pneg %p2173_p5 }
  0x3d   : > { %p2179_p12 = pnand %p2178_p6, %p2174_p10 }
  0x3f   : > { %2182 = shalt.err (!%p2179_p12)
}
  0x40   : > { %s2183_s22 = scalar_lea.vmem %s2397_s29, 2048  ;;  %s2274_s23 = smov [#allocation2]  }
  0x41   : > { %p2184_p3 = scmp.ne.s32.totalorder %s2397_s29, %s2183_s22  ;;  %s2188_s24 = sshll.u32 %s2274_s23, 4  ;;  %s2189_s24 = int_to_ptr.vmem [resolvable:$false] %s2188_s24 }
  0x42   : > { %s2190_s25 = scalar_lea.vmem %s2189_s24, 4096  ;;  %p2191_p5 = scmp.lt.s32.totalorder %s2397_s29, %s2189_s24 }
  0x43   : > { %p2186_p9 = pnand %p2184_p3, %p2172_p0  ;;  %p2192_p7 = scmp.lt.s32.totalorder %s2190_s25, %s2183_s22 }
  0x45   : > { %p2187_p13 = pneg %p2186_p9  ;;  %p2193_p4 = por %p2192_p7, %p2191_p5 }
  0x47   : > { %p2194_p8 = pnand %p2193_p4, %p2187_p13 }
  0x49   : > { %2197 = shalt.err (!%p2194_p8)
}
  0x4a   : > { %s2275_s26 = smov 128   ;;  %s2276_s28 = smov 8  }
  0x4b   : > { %1889 = dma.hbm_to_vmem [thread:$0]  (!%p2399_p11), %s2395_s27, 2048, %s2397_s29, %s2403_s4, %s2275_s26, %s2275_s26, %s2276_s28  }
  0x4c   : > { %p2544_p0 = scmp.ne.s32.totalorder %s2539_s20, 0 }
  0x4d   : > { %s2427_s5 = sand.u32 (!%p2544_p0), 1, %s2258_s13   ;;  %p2545_p4 = scmp.ne.s32.totalorder (!%p2544_p0), %s2537_s18, 0 }
  0x4e   : > { %181 = sbr.rel (%p2544_p0) target bundleno = 1437 (0x59d), region = 32  ;;  %s1514_s6 = sshll.u32 (!%p2544_p0), %s2427_s5, 7 }
  0x4f   : > { %s184_s7 = scalar_lea.sflag (!%p2544_p0), [#allocation3], %s2427_s5  ;;  %s2433_s8 = scalar_lea.vmem (!%p2544_p0), [#allocation2], %s1514_s6 }
  0x53   : > { %2241 = dma.done.wait (%p2545_p4), %s184_s7, 2048  }
  0x54   : > { %2243 = vsyncadd (%p2545_p4), %s184_s7, 4294965248  ;;  %p2546_p8 = scmp.eq.s32.totalorder %s2321_s16, 0 }
  0x56   : > { %2245 = dma.done.wait (%p2546_p8), [#allocation6], 6240   ;;  %p2547_p7 = pmov %p2546_p8 }
  0x57   : > { %v1942_v0 = vld [vmem:[#allocation5 + $0x38] sm:$0xff]   ;;  %v1943_v1 = vld [vmem:[#allocation5 + $0x30] sm:$0xff]   ;;  %v1944_v2 = vld [vmem:[#allocation5 + $0x28] sm:$0xff]   ;;  %s2461_s18 = scalar_lea.vmem [#allocation8], %s1514_s6  ;;  %s1578_s20 = sshll.u32 %s2321_s16, 11 }
  0x58   : > { %2247 = vsyncadd (%p2547_p7), [#allocation6], 4294961056  ;;  %1675 = vmatprep.subr.bf16.mxu0 %v1942_v0  ;;  %v1945_v3 = vld [vmem:[#allocation5 + $0x20] sm:$0xff]   ;;  %v222_v5 = vld [vmem:[%s2433_s8 + $0x8] sm:$0xff]  ;;  %s1413_s27 = sshll.u32 %s2461_s18, 4  ;;  %s2482_s4 = scalar_lea.hbm %s2532_s3, %s1578_s20  ;;  %s2484_s27 = int_to_ptr.vmem [resolvable:$true] %s1413_s27 }
  0x59   : > { %1676 = vmatpush3.bf16.msra.mxu0 %v1942_v0  ;;  %v221_v4 = vld [vmem:[%s2433_s8] sm:$0xff]  ;;  %v1946_v7 = vld [vmem:[#allocation5 + $0x18] sm:$0xff]   ;;  %v1947_v8 = vld [vmem:[#allocation5 + $0x10] sm:$0xff]   ;;  %s1400_s10 = scalar_lea.sflag [#allocation4], %s2427_s5  ;;  %s2198_s16 = scalar_lea.vmem %s2484_s27, 2048 }
  0x5a   : > { %1677 = vmatprep.subr.bf16.mxu0 %v1943_v1  ;;  %v237_v6 = vpack.c.bf16 %v222_v5, %v221_v4  ;;  %v1950_v9 = vld [vmem:[#allocation5 + $0x78] sm:$0xff]   ;;  %v1951_v10 = vld [vmem:[#allocation5 + $0x70] sm:$0xff]   ;;  %v1948_v11 = vld [vmem:[#allocation5 + $0x8] sm:$0xff]   ;;  %p2199_p11 = scmp.ne.s32.totalorder %s2484_s27, %s2198_s16  ;;  %p2548_p10 = scmp.ne.s32.totalorder %s2542_s21, 0 }
  0x5b   : > { %1707 = vmatprep.subr.bf16.mxu1 %v1950_v9  ;;  %v1949_v12 = vld [vmem:[#allocation5] sm:$0xff]   ;;  %v223_v13 = vld [vmem:[%s2433_s8 + $0x10] sm:$0xff]  ;;  %v224_v14 = vld [vmem:[%s2433_s8 + $0x18] sm:$0xff]  ;;  %s2277_s11 = smov [#allocation8]  }
  0x5c   : > { %1691 = vmatprep.mubr.bf16.mxu0 %v237_v6  ;;  %1708 = vmatpush3.bf16.msra.mxu1 %v1950_v9  ;;  %v225_v15 = vld [vmem:[%s2433_s8 + $0x20] sm:$0xff]  ;;  %v226_v16 = vld [vmem:[%s2433_s8 + $0x28] sm:$0xff]  ;;  %v238_v17 = vpack.c.bf16 %v224_v14, %v223_v13  ;;  %v227_v19 = vld [vmem:[%s2433_s8 + $0x30] sm:$0xff]  ;;  %p2200_p1 = pnand %p2199_p11, %p2548_p10  ;;  %s2202_s22 = sshll.u32 %s2277_s11, 4  ;;  %s2203_s22 = int_to_ptr.vmem [resolvable:$false] %s2202_s22 }
  0x5d   : > { %1678 = vmatpush3.bf16.msra.mxu0 %v1943_v1  ;;  %1709 = vmatprep.subr.bf16.mxu1 %v1951_v10  ;;  %v239_v18 = vpack.c.bf16 %v226_v16, %v225_v15  ;;  %v228_v20 = vld [vmem:[%s2433_s8 + $0x38] sm:$0xff]  ;;  %v229_v21 = vld [vmem:[%s2433_s8 + $0x40] sm:$0xff]  ;;  %v230_v22 = vld [vmem:[%s2433_s8 + $0x48] sm:$0xff]  ;;  %s2204_s23 = scalar_lea.vmem %s2203_s22, 4096  ;;  %p2205_p6 = scmp.lt.s32.totalorder %s2484_s27, %s2203_s22 }
  0x5e   : > { %1679 = vmatprep.subr.bf16.mxu0 %v1944_v2  ;;  %v240_v23 = vpack.c.bf16 %v228_v20, %v227_v19  ;;  %v241_v24 = vpack.c.bf16 %v230_v22, %v229_v21  ;;  %v231_v25 = vld [vmem:[%s2433_s8 + $0x50] sm:$0xff]  ;;  %v232_v26 = vld [vmem:[%s2433_s8 + $0x58] sm:$0xff]  ;;  %v233_v27 = vld [vmem:[%s2433_s8 + $0x60] sm:$0xff]  ;;  %p2201_p2 = pneg %p2200_p1  ;;  %p2206_p12 = scmp.lt.s32.totalorder %s2204_s23, %s2198_s16 }
  0x5f   : > { %v234_v28 = vld [vmem:[%s2433_s8 + $0x68] sm:$0xff]  ;;  %v242_v29 = vpack.c.bf16 %v232_v26, %v231_v25  ;;  %v235_v31 = vld [vmem:[%s2433_s8 + $0x70] sm:$0xff]  ;;  %v236_v32 = vld [vmem:[%s2433_s8 + $0x78] sm:$0xff] }
  0x60   : > { %1710 = vmatpush3.bf16.msra.mxu1 %v1951_v10  ;;  %v243_v30 = vpack.c.bf16 %v234_v28, %v233_v27  ;;  %v244_v33 = vpack.c.bf16 %v236_v32, %v235_v31  ;;  %v1952_v34 = vld [vmem:[#allocation5 + $0x68] sm:$0xff]   ;;  %v1953_v35 = vld [vmem:[#allocation5 + $0x60] sm:$0xff]   ;;  %v1954_v36 = vld [vmem:[#allocation5 + $0x58] sm:$0xff]   ;;  %p2207_p3 = por %p2206_p12, %p2205_p6 }
  0x61   : > { %1680 = vmatpush3.bf16.msra.mxu0 %v1944_v2  ;;  %1711 = vmatprep.subr.bf16.mxu1 %v1952_v34  ;;  %v1955_v37 = vld [vmem:[#allocation5 + $0x50] sm:$0xff]   ;;  %v1956_v38 = vld [vmem:[#allocation5 + $0x48] sm:$0xff]   ;;  %v1957_v39 = vld [vmem:[#allocation5 + $0x40] sm:$0xff]  }
  0x62   : > { %1681 = vmatprep.subr.bf16.mxu0 %v1945_v3  ;;  %v1958_v40 = vld [vmem:[#allocation5 + $0xb8] sm:$0xff]   ;;  %v1959_v41 = vld [vmem:[#allocation5 + $0xb0] sm:$0xff]   ;;  %v1518_v43 = vld [vmem:[#allocation7] ss:$0 sm:$0xff]  ;;  %p2208_p9 = pnand %p2207_p3, %p2201_p2 }
  0x64   : > { %1712 = vmatpush3.bf16.msra.mxu1 %v1952_v34 }
  0x65   : > { %1682 = vmatpush3.bf16.msra.mxu0 %v1945_v3  ;;  %1713 = vmatprep.subr.bf16.mxu1 %v1953_v35 }
  0x66   : > { %1683 = vmatprep.subr.bf16.mxu0 %v1946_v7 }
  0x68   : > { %1714 = vmatpush3.bf16.msra.mxu1 %v1953_v35  ;;  %v1960_v35 = vld [vmem:[#allocation5 + $0xa8] sm:$0xff]  }
  0x69   : > { %1684 = vmatpush3.bf16.msra.mxu0 %v1946_v7  ;;  %1715 = vmatprep.subr.bf16.mxu1 %v1954_v36 }
  0x6a   : > { %1685 = vmatprep.subr.bf16.mxu0 %v1947_v8 }
  0x6c   : > { %1716 = vmatpush3.bf16.msra.mxu1 %v1954_v36  ;;  %v1961_v36 = vld [vmem:[#allocation5 + $0xa0] sm:$0xff]  }
  0x6d   : > { %1686 = vmatpush3.bf16.msra.mxu0 %v1947_v8  ;;  %1717 = vmatprep.subr.bf16.mxu1 %v1955_v37 }
  0x6e   : > { %1687 = vmatprep.subr.bf16.mxu0 %v1948_v11 }
  0x70   : > { %1718 = vmatpush3.bf16.msra.mxu1 %v1955_v37  ;;  %v1962_v37 = vld [vmem:[#allocation5 + $0x98] sm:$0xff]  }
  0x71   : > { %1688 = vmatpush3.bf16.msra.mxu0 %v1948_v11  ;;  %1719 = vmatprep.subr.bf16.mxu1 %v1956_v38 }
  0x72   : > { %1689 = vmatprep.subr.bf16.mxu0 %v1949_v12 }
  0x74   : > { %1720 = vmatpush3.bf16.msra.mxu1 %v1956_v38  ;;  %v1963_v38 = vld [vmem:[#allocation5 + $0x90] sm:$0xff]  }
  0x75   : > { %1690 = vmatpush3.bf16.msra.mxu0 %v1949_v12  ;;  %1721 = vmatprep.subr.bf16.mxu1 %v1957_v39 }
  0x76   : > { %1739 = vmatprep.subr.bf16.mxu0 %v1958_v40 }
  0x78   : > { %1692 = vmatmul.mubr.bf16.vlgmr.msra.gmra.mxu0 %v238_v17  ;;  %1722 = vmatpush3.bf16.msra.mxu1 %v1957_v39  ;;  %v1964_v39 = vld [vmem:[#allocation5 + $0x88] sm:$0xff]  }
  0x79   : > { %1695 = vmatprep.mubr.bf16.mxu0 %v239_v18  ;;  %1740 = vmatpush3.bf16.msra.mxu0 %v1958_v40  ;;  %v1965_v40 = vld [vmem:[#allocation5 + $0x80] sm:$0xff]  }
  0x7a   : > { %1741 = vmatprep.subr.bf16.mxu0 %v1959_v41 }
  0x7d   : > { %1742 = vmatpush3.bf16.msra.mxu0 %v1959_v41  ;;  %v1966_v41 = vld [vmem:[#allocation5 + $0xf8] sm:$0xff]  }
  0x7e   : > { %1743 = vmatprep.subr.bf16.mxu0 %v1960_v35  ;;  %1771 = vmatprep.subr.bf16.mxu1 %v1966_v41 }
  0x80   : > { %1696 = vmatmul.mubr.bf16.gmra.mxu0 %v240_v23 }
  0x81   : > { %1699 = vmatprep.mubr.bf16.mxu0 %v241_v24  ;;  %1744 = vmatpush3.bf16.msra.mxu0 %v1960_v35 }
  0x82   : > { %1745 = vmatprep.subr.bf16.mxu0 %v1961_v36 }
  0x85   : > { %1746 = vmatpush3.bf16.msra.mxu0 %v1961_v36 }
  0x86   : > { %1747 = vmatprep.subr.bf16.mxu0 %v1962_v37 }
  0x88   : > { %1700 = vmatmul.mubr.bf16.gmra.mxu0 %v242_v29 }
  0x89   : > { %1703 = vmatprep.mubr.bf16.mxu0 %v243_v30  ;;  %1748 = vmatpush3.bf16.msra.mxu0 %v1962_v37 }
  0x8a   : > { %1749 = vmatprep.subr.bf16.mxu0 %v1963_v38 }
  0x8d   : > { %1750 = vmatpush3.bf16.msra.mxu0 %v1963_v38 }
  0x8e   : > { %1751 = vmatprep.subr.bf16.mxu0 %v1964_v39 }
  0x90   : > { %1704 = vmatmul.mubr.bf16.gmra.mxu0 %v244_v33 }
  0x91   : > { %1752 = vmatpush3.bf16.msra.mxu0 %v1964_v39  ;;  %v1971_v39 = vld [vmem:[#allocation5 + $0xd0] sm:$0xff]  }
  0x92   : > { %1753 = vmatprep.subr.bf16.mxu0 %v1965_v40 }
  0x95   : > { %1754 = vmatpush3.bf16.msra.mxu0 %v1965_v40  ;;  %v1972_v40 = vld [vmem:[#allocation5 + $0xc8] sm:$0xff]  }
 0x138   : > { %v1693_v42 = vpop.f32.mrf.mxu0 }
 0x139   : > { %v359_v48 = vadd.f32 %v1693_v42, %v1518_v43  ;;  %v1967_v42 = vld [vmem:[#allocation5 + $0xf0] sm:$0xff]  }
 0x13a   : > { %v350_v44 = vpop.f32.mrf.mxu0 }
 0x13b   : > { %v351_v45 = vadd.f32 %v1518_v43, %v350_v44  ;;  %v1969_v44 = vld [vmem:[#allocation5 + $0xe0] sm:$0xff]  }
 0x13c   : > { %v1694_v46 = vpop.f32.mrf.mxu0 }
 0x13d   : > { %v362_v47 = vadd.f32 %v1694_v46, %v1518_v43  ;;  %1990 = vtanh.f32 %v351_v45  ;;  %v1970_v45 = vld [vmem:[#allocation5 + $0xd8] sm:$0xff]  }
 0x13e   : > { %v353_v49 = vpop.f32.mrf.mxu0 }
 0x13f   : > { %v354_v50 = vadd.f32 %v1518_v43, %v353_v49  ;;  %1992 = vtanh.f32 %v362_v47  ;;  %v1527_v47 = vld [vmem:[#allocation7 + $0x1] ss:$0 sm:$0xff] }
 0x140   : > { %v1697_v51 = vpop.f32.mrf.mxu0 }
 0x141   : > { %1994 = vtanh.f32 %v354_v50  ;;  %v375_v56 = vadd.f32 %v1697_v51, %v1518_v43 }
 0x142   : > { %1996 = vtanh.f32 %v359_v48  ;;  %v366_v52 = vpop.f32.mrf.mxu0 }
 0x143   : > { %v367_v53 = vadd.f32 %v1518_v43, %v366_v52 }
 0x144   : > { %v1698_v54 = vpop.f32.mrf.mxu0 }
 0x145   : > { %v378_v55 = vadd.f32 %v1698_v54, %v1518_v43  ;;  %1998 = vtanh.f32 %v367_v53 }
 0x146   : > { %v369_v57 = vpop.f32.mrf.mxu0 }
 0x147   : > { %v370_v58 = vadd.f32 %v1518_v43, %v369_v57  ;;  %2000 = vtanh.f32 %v378_v55 }
 0x148   : > { %v1701_v59 = vpop.f32.mrf.mxu0 }
 0x149   : > { %2002 = vtanh.f32 %v370_v58  ;;  %v391_v3 = vadd.f32 %v1701_v59, %v1518_v43 }
 0x14a   : > { %2004 = vtanh.f32 %v375_v56  ;;  %v382_v60 = vpop.f32.mrf.mxu0  ;;  %v1991_v62 = vpop.eup %1990 }
 0x14b   : > { %v383_v61 = vadd.f32 %v1518_v43, %v382_v60 }
 0x14c   : > { %v1702_v63 = vpop.f32.mrf.mxu0  ;;  %v1993_v0 = vpop.eup %1992 }
 0x14d   : > { %v394_v1 = vadd.f32 %v1702_v63, %v1518_v43  ;;  %2006 = vtanh.f32 %v383_v61 }
 0x14e   : > { %v1995_v2 = vpop.eup %1994  ;;  %v385_v4 = vpop.f32.mrf.mxu0 }
 0x14f   : > { %v1997_v5 = vpop.eup %1996  ;;  %v386_v6 = vadd.f32 %v1518_v43, %v385_v4  ;;  %v429_v7 = vpack.c.bf16 %v1995_v2, %v1991_v62  ;;  %2008 = vtanh.f32 %v394_v1 }
 0x150   : > { %v1705_v8 = vpop.f32.mrf.mxu0  ;;  %v430_v9 = vpack.c.bf16 %v1993_v0, %v1997_v5 }
 0x151   : > { %2010 = vtanh.f32 %v386_v6  ;;  %1723 = vmatprep.mubr.bf16.mxu1 %v429_v7  ;;  %v407_v17 = vadd.f32 %v1705_v8, %v1518_v43 }
 0x152   : > { %2012 = vtanh.f32 %v391_v3  ;;  %v398_v10 = vpop.f32.mrf.mxu0  ;;  %1724 = vmatmul.mubr.bf16.vlgmr.msra.gmra.mxu1 %v430_v9  ;;  %v1999_v12 = vpop.eup %1998 }
 0x153   : > { %v399_v11 = vadd.f32 %v1518_v43, %v398_v10  ;;  %1772 = vmatpush3.bf16.msra.mxu1 %v1966_v41  ;;  %v1973_v41 = vld [vmem:[#allocation5 + $0xc0] sm:$0xff]  }
 0x154   : > { %v1706_v13 = vpop.f32.mrf.mxu0  ;;  %v2001_v14 = vpop.eup %2000  ;;  %1773 = vmatprep.subr.bf16.mxu1 %v1967_v42 }
 0x155   : > { %v410_v15 = vadd.f32 %v1706_v13, %v1518_v43  ;;  %2014 = vtanh.f32 %v399_v11 }
 0x156   : > { %v2003_v16 = vpop.eup %2002  ;;  %v401_v18 = vpop.f32.mrf.mxu0 }
 0x157   : > { %v2005_v19 = vpop.eup %2004  ;;  %v402_v20 = vadd.f32 %v1518_v43, %v401_v18  ;;  %v431_v21 = vpack.c.bf16 %v2003_v16, %v1999_v12  ;;  %2016 = vtanh.f32 %v410_v15  ;;  %v1968_v43 = vld [vmem:[#allocation5 + $0xe8] sm:$0xff]   ;;  %1774 = vmatpush3.bf16.msra.mxu1 %v1967_v42  ;;  %v1974_v42 = vld [vmem:[#allocation5 + $0x138] sm:$0xff]  }
 0x158   : > { %v432_v22 = vpack.c.bf16 %v2001_v14, %v2005_v19  ;;  %1775 = vmatprep.subr.bf16.mxu1 %v1968_v43  ;;  %1803 = vmatprep.subr.bf16.mxu0 %v1974_v42 }
 0x159   : > { %2018 = vtanh.f32 %v402_v20  ;;  %1727 = vmatprep.mubr.bf16.mxu1 %v431_v21 }
 0x15a   : > { %2020 = vtanh.f32 %v407_v17  ;;  %1728 = vmatmul.mubr.bf16.gmra.mxu1 %v432_v22  ;;  %v2007_v23 = vpop.eup %2006 }
 0x15b   : > { %1776 = vmatpush3.bf16.msra.mxu1 %v1968_v43  ;;  %v1975_v43 = vld [vmem:[#allocation5 + $0x130] sm:$0xff]  }
 0x15c   : > { %v2009_v24 = vpop.eup %2008  ;;  %1777 = vmatprep.subr.bf16.mxu1 %v1969_v44 }
 0x15e   : > { %v2011_v25 = vpop.eup %2010 }
 0x15f   : > { %v2013_v26 = vpop.eup %2012  ;;  %v433_v27 = vpack.c.bf16 %v2011_v25, %v2007_v23  ;;  %1778 = vmatpush3.bf16.msra.mxu1 %v1969_v44 }
 0x160   : > { %v434_v28 = vpack.c.bf16 %v2009_v24, %v2013_v26  ;;  %1779 = vmatprep.subr.bf16.mxu1 %v1970_v45 }
 0x161   : > { %1731 = vmatprep.mubr.bf16.mxu1 %v433_v27 }
 0x162   : > { %1732 = vmatmul.mubr.bf16.gmra.mxu1 %v434_v28  ;;  %v2015_v29 = vpop.eup %2014 }
 0x163   : > { %1780 = vmatpush3.bf16.msra.mxu1 %v1970_v45 }
 0x164   : > { %v2017_v30 = vpop.eup %2016  ;;  %1781 = vmatprep.subr.bf16.mxu1 %v1971_v39 }
 0x166   : > { %v2019_v31 = vpop.eup %2018 }
 0x167   : > { %v2021_v32 = vpop.eup %2020  ;;  %v435_v33 = vpack.c.bf16 %v2019_v31, %v2015_v29  ;;  %1782 = vmatpush3.bf16.msra.mxu1 %v1971_v39  ;;  %v1978_v39 = vld [vmem:[#allocation5 + $0x118] sm:$0xff]  }
 0x168   : > { %v436_v34 = vpack.c.bf16 %v2017_v30, %v2021_v32  ;;  %1783 = vmatprep.subr.bf16.mxu1 %v1972_v40 }
 0x169   : > { %1735 = vmatprep.mubr.bf16.mxu1 %v435_v33 }
 0x16a   : > { %1736 = vmatmul.mubr.bf16.gmra.mxu1 %v436_v34 }
 0x16b   : > { %1784 = vmatpush3.bf16.msra.mxu1 %v1972_v40  ;;  %v1979_v40 = vld [vmem:[#allocation5 + $0x110] sm:$0xff]  }
 0x16c   : > { %1785 = vmatprep.subr.bf16.mxu1 %v1973_v41 }
 0x16f   : > { %1786 = vmatpush3.bf16.msra.mxu1 %v1973_v41  ;;  %v1980_v41 = vld [vmem:[#allocation5 + $0x108] sm:$0xff]  }
 0x212   : > { %v1725_v46 = vpop.f32.mrf.mxu1 }
 0x213   : > { %v553_v52 = vadd.f32 %v1725_v46, %v1527_v47  ;;  %v1536_v46 = vld [vmem:[#allocation7 + $0x2] ss:$0 sm:$0xff] }
 0x214   : > { %v544_v48 = vpop.f32.mrf.mxu1 }
 0x215   : > { %v545_v49 = vadd.f32 %v1527_v47, %v544_v48 }
 0x216   : > { %v1726_v50 = vpop.f32.mrf.mxu1 }
 0x217   : > { %v556_v51 = vadd.f32 %v1726_v50, %v1527_v47  ;;  %2022 = vtanh.f32 %v545_v49 }
 0x218   : > { %v547_v53 = vpop.f32.mrf.mxu1 }
 0x219   : > { %v548_v54 = vadd.f32 %v1527_v47, %v547_v53  ;;  %2024 = vtanh.f32 %v556_v51 }
 0x21a   : > { %v1729_v55 = vpop.f32.mrf.mxu1 }
 0x21b   : > { %2026 = vtanh.f32 %v548_v54  ;;  %v569_v60 = vadd.f32 %v1729_v55, %v1527_v47 }
 0x21c   : > { %2028 = vtanh.f32 %v553_v52  ;;  %v560_v56 = vpop.f32.mrf.mxu1 }
 0x21d   : > { %v561_v57 = vadd.f32 %v1527_v47, %v560_v56 }
 0x21e   : > { %v1730_v58 = vpop.f32.mrf.mxu1 }
 0x21f   : > { %v572_v59 = vadd.f32 %v1730_v58, %v1527_v47  ;;  %2030 = vtanh.f32 %v561_v57 }
 0x220   : > { %v563_v61 = vpop.f32.mrf.mxu1 }
 0x221   : > { %v564_v62 = vadd.f32 %v1527_v47, %v563_v61  ;;  %2032 = vtanh.f32 %v572_v59 }
 0x222   : > { %v1733_v63 = vpop.f32.mrf.mxu1 }
 0x223   : > { %2034 = vtanh.f32 %v564_v62  ;;  %v585_v7 = vadd.f32 %v1733_v63, %v1527_v47 }
 0x224   : > { %2036 = vtanh.f32 %v569_v60  ;;  %v576_v0 = vpop.f32.mrf.mxu1  ;;  %v2023_v2 = vpop.eup %2022 }
 0x225   : > { %v577_v1 = vadd.f32 %v1527_v47, %v576_v0 }
 0x226   : > { %v1734_v3 = vpop.f32.mrf.mxu1  ;;  %v2025_v4 = vpop.eup %2024 }
 0x227   : > { %v588_v5 = vadd.f32 %v1734_v3, %v1527_v47  ;;  %2038 = vtanh.f32 %v577_v1 }
 0x228   : > { %v2027_v6 = vpop.eup %2026  ;;  %v579_v8 = vpop.f32.mrf.mxu1 }
 0x229   : > { %v2029_v9 = vpop.eup %2028  ;;  %v580_v10 = vadd.f32 %v1527_v47, %v579_v8  ;;  %v623_v11 = vpack.c.bf16 %v2027_v6, %v2023_v2  ;;  %2040 = vtanh.f32 %v588_v5 }
 0x22a   : > { %v1737_v12 = vpop.f32.mrf.mxu1  ;;  %v624_v13 = vpack.c.bf16 %v2025_v4, %v2029_v9 }
 0x22b   : > { %2042 = vtanh.f32 %v580_v10  ;;  %1755 = vmatprep.mubr.bf16.mxu0 %v623_v11  ;;  %v601_v21 = vadd.f32 %v1737_v12, %v1527_v47 }
 0x22c   : > { %2044 = vtanh.f32 %v585_v7  ;;  %v592_v14 = vpop.f32.mrf.mxu1  ;;  %1756 = vmatmul.mubr.bf16.vlgmr.msra.gmra.mxu0 %v624_v13  ;;  %v2031_v16 = vpop.eup %2030 }
 0x22d   : > { %v593_v15 = vadd.f32 %v1527_v47, %v592_v14  ;;  %1804 = vmatpush3.bf16.msra.mxu0 %v1974_v42  ;;  %v1981_v42 = vld [vmem:[#allocation5 + $0x100] sm:$0xff]  }
 0x22e   : > { %v1738_v17 = vpop.f32.mrf.mxu1  ;;  %v2033_v18 = vpop.eup %2032  ;;  %1805 = vmatprep.subr.bf16.mxu0 %v1975_v43 }
 0x22f   : > { %v604_v19 = vadd.f32 %v1738_v17, %v1527_v47  ;;  %2046 = vtanh.f32 %v593_v15 }
 0x230   : > { %v2035_v20 = vpop.eup %2034  ;;  %v595_v22 = vpop.f32.mrf.mxu1 }
 0x231   : > { %v2037_v23 = vpop.eup %2036  ;;  %v596_v24 = vadd.f32 %v1527_v47, %v595_v22  ;;  %v625_v25 = vpack.c.bf16 %v2035_v20, %v2031_v16  ;;  %2048 = vtanh.f32 %v604_v19  ;;  %1806 = vmatpush3.bf16.msra.mxu0 %v1975_v43  ;;  %v1982_v43 = vld [vmem:[#allocation5 + $0x178] sm:$0xff]  }
 0x232   : > { %v626_v26 = vpack.c.bf16 %v2033_v18, %v2037_v23  ;;  %1835 = vmatprep.subr.bf16.mxu1 %v1982_v43 }
 0x233   : > { %2050 = vtanh.f32 %v596_v24  ;;  %1759 = vmatprep.mubr.bf16.mxu0 %v625_v25 }
 0x234   : > { %2052 = vtanh.f32 %v601_v21  ;;  %1760 = vmatmul.mubr.bf16.gmra.mxu0 %v626_v26  ;;  %v2039_v27 = vpop.eup %2038 }
 0x236   : > { %v2041_v28 = vpop.eup %2040 }
 0x238   : > { %v2043_v29 = vpop.eup %2042 }
 0x239   : > { %v2045_v30 = vpop.eup %2044  ;;  %v627_v31 = vpack.c.bf16 %v2043_v29, %v2039_v27 }
 0x23a   : > { %v628_v32 = vpack.c.bf16 %v2041_v28, %v2045_v30 }
 0x23b   : > { %1763 = vmatprep.mubr.bf16.mxu0 %v627_v31 }
 0x23c   : > { %1764 = vmatmul.mubr.bf16.gmra.mxu0 %v628_v32  ;;  %v2047_v33 = vpop.eup %2046 }
 0x23e   : > { %v2049_v34 = vpop.eup %2048 }
 0x240   : > { %v2051_v35 = vpop.eup %2050 }
 0x241   : > { %v2053_v36 = vpop.eup %2052  ;;  %v629_v37 = vpack.c.bf16 %v2051_v35, %v2047_v33 }
 0x242   : > { %v630_v38 = vpack.c.bf16 %v2049_v34, %v2053_v36 }
 0x243   : > { %1767 = vmatprep.mubr.bf16.mxu0 %v629_v37  ;;  %v1976_v37 = vld [vmem:[#allocation5 + $0x128] sm:$0xff]  }
 0x244   : > { %1768 = vmatmul.mubr.bf16.gmra.mxu0 %v630_v38  ;;  %1807 = vmatprep.subr.bf16.mxu0 %v1976_v37  ;;  %v1977_v38 = vld [vmem:[#allocation5 + $0x120] sm:$0xff]  }
 0x245   : > { %1808 = vmatpush3.bf16.msra.mxu0 %v1976_v37 }
 0x246   : > { %1809 = vmatprep.subr.bf16.mxu0 %v1977_v38 }
 0x249   : > { %1810 = vmatpush3.bf16.msra.mxu0 %v1977_v38  ;;  %v1984_v38 = vld [vmem:[#allocation5 + $0x168] sm:$0xff]  }
 0x24a   : > { %1811 = vmatprep.subr.bf16.mxu0 %v1978_v39 }
 0x24d   : > { %1812 = vmatpush3.bf16.msra.mxu0 %v1978_v39  ;;  %v1985_v39 = vld [vmem:[#allocation5 + $0x160] sm:$0xff]  }
 0x24e   : > { %1813 = vmatprep.subr.bf16.mxu0 %v1979_v40 }
 0x251   : > { %1814 = vmatpush3.bf16.msra.mxu0 %v1979_v40  ;;  %v1986_v40 = vld [vmem:[#allocation5 + $0x158] sm:$0xff]  }
 0x252   : > { %1815 = vmatprep.subr.bf16.mxu0 %v1980_v41 }
 0x255   : > { %1816 = vmatpush3.bf16.msra.mxu0 %v1980_v41  ;;  %v1987_v41 = vld [vmem:[#allocation5 + $0x150] sm:$0xff]  }
 0x256   : > { %1817 = vmatprep.subr.bf16.mxu0 %v1981_v42 }
 0x259   : > { %1818 = vmatpush3.bf16.msra.mxu0 %v1981_v42  ;;  %v1988_v42 = vld [vmem:[#allocation5 + $0x148] sm:$0xff]  }
 0x2ec   : > { %v1757_v44 = vpop.f32.mrf.mxu0 }
 0x2ed   : > { %v747_v50 = vadd.f32 %v1757_v44, %v1536_v46  ;;  %v1983_v44 = vld [vmem:[#allocation5 + $0x170] sm:$0xff]  }
 0x2ee   : > { %v738_v45 = vpop.f32.mrf.mxu0 }
 0x2ef   : > { %v739_v48 = vadd.f32 %v1536_v46, %v738_v45  ;;  %v803_v57 = vmax.f32 %v747_v50, 0.0 }
 0x2f0   : > { %v1758_v47 = vpop.f32.mrf.mxu0 }
 0x2f1   : > { %v750_v49 = vadd.f32 %v1758_v47, %v1536_v46  ;;  %v801_v55 = vmax.f32 %v739_v48, 0.0 }
 0x2f2   : > { %v741_v51 = vpop.f32.mrf.mxu0 }
 0x2f3   : > { %v742_v52 = vadd.f32 %v1536_v46, %v741_v51  ;;  %v804_v53 = vmax.f32 %v750_v49, 0.0 }
 0x2f4   : > { %v1761_v54 = vpop.f32.mrf.mxu0 }
 0x2f5   : > { %v802_v56 = vmax.f32 %v742_v52, 0.0  ;;  %v818_v60 = vpack.c.bf16 %v804_v53, %v803_v57  ;;  %v763_v0 = vadd.f32 %v1761_v54, %v1536_v46 }
 0x2f6   : > { %v754_v58 = vpop.f32.mrf.mxu0 }
 0x2f7   : > { %v817_v59 = vpack.c.bf16 %v802_v56, %v801_v55  ;;  %v755_v62 = vadd.f32 %v1536_v46, %v754_v58  ;;  %v807_v7 = vmax.f32 %v763_v0, 0.0 }
 0x2f8   : > { %v1762_v61 = vpop.f32.mrf.mxu0 }
 0x2f9   : > { %v766_v63 = vadd.f32 %v1762_v61, %v1536_v46  ;;  %1787 = vmatprep.mubr.bf16.mxu1 %v817_v59  ;;  %v805_v5 = vmax.f32 %v755_v62, 0.0 }
 0x2fa   : > { %v757_v1 = vpop.f32.mrf.mxu0  ;;  %1788 = vmatmul.mubr.bf16.vlgmr.msra.gmra.mxu1 %v818_v60 }
 0x2fb   : > { %v758_v2 = vadd.f32 %v1536_v46, %v757_v1  ;;  %v808_v3 = vmax.f32 %v766_v63, 0.0  ;;  %1836 = vmatpush3.bf16.msra.mxu1 %v1982_v43  ;;  %v1989_v43 = vld [vmem:[#allocation5 + $0x140] sm:$0xff]  }
 0x2fc   : > { %v1765_v4 = vpop.f32.mrf.mxu0  ;;  %1837 = vmatprep.subr.bf16.mxu1 %v1983_v44 }
 0x2fd   : > { %v806_v6 = vmax.f32 %v758_v2, 0.0  ;;  %v820_v10 = vpack.c.bf16 %v808_v3, %v807_v7  ;;  %v779_v14 = vadd.f32 %v1765_v4, %v1536_v46 }
 0x2fe   : > { %v770_v8 = vpop.f32.mrf.mxu0 }
 0x2ff   : > { %v819_v9 = vpack.c.bf16 %v806_v6, %v805_v5  ;;  %v771_v12 = vadd.f32 %v1536_v46, %v770_v8  ;;  %v811_v21 = vmax.f32 %v779_v14, 0.0  ;;  %1838 = vmatpush3.bf16.msra.mxu1 %v1983_v44 }
 0x300   : > { %v1766_v11 = vpop.f32.mrf.mxu0  ;;  %1839 = vmatprep.subr.bf16.mxu1 %v1984_v38 }
 0x301   : > { %v782_v13 = vadd.f32 %v1766_v11, %v1536_v46  ;;  %1791 = vmatprep.mubr.bf16.mxu1 %v819_v9  ;;  %v809_v19 = vmax.f32 %v771_v12, 0.0 }
 0x302   : > { %v773_v15 = vpop.f32.mrf.mxu0  ;;  %1792 = vmatmul.mubr.bf16.gmra.mxu1 %v820_v10 }
 0x303   : > { %v774_v16 = vadd.f32 %v1536_v46, %v773_v15  ;;  %v812_v17 = vmax.f32 %v782_v13, 0.0  ;;  %1840 = vmatpush3.bf16.msra.mxu1 %v1984_v38 }
 0x304   : > { %v1769_v18 = vpop.f32.mrf.mxu0  ;;  %1841 = vmatprep.subr.bf16.mxu1 %v1985_v39 }
 0x305   : > { %v810_v20 = vmax.f32 %v774_v16, 0.0  ;;  %v822_v24 = vpack.c.bf16 %v812_v17, %v811_v21  ;;  %v795_v28 = vadd.f32 %v1769_v18, %v1536_v46 }
 0x306   : > { %v786_v22 = vpop.f32.mrf.mxu0 }
 0x307   : > { %v821_v23 = vpack.c.bf16 %v810_v20, %v809_v19  ;;  %v787_v26 = vadd.f32 %v1536_v46, %v786_v22  ;;  %v815_v34 = vmax.f32 %v795_v28, 0.0  ;;  %1842 = vmatpush3.bf16.msra.mxu1 %v1985_v39 }
 0x308   : > { %v1770_v25 = vpop.f32.mrf.mxu0  ;;  %1843 = vmatprep.subr.bf16.mxu1 %v1986_v40 }
 0x309   : > { %v798_v27 = vadd.f32 %v1770_v25, %v1536_v46  ;;  %1795 = vmatprep.mubr.bf16.mxu1 %v821_v23  ;;  %v813_v32 = vmax.f32 %v787_v26, 0.0 }
 0x30a   : > { %v789_v29 = vpop.f32.mrf.mxu0  ;;  %1796 = vmatmul.mubr.bf16.gmra.mxu1 %v822_v24 }
 0x30b   : > { %v790_v30 = vadd.f32 %v1536_v46, %v789_v29  ;;  %v816_v31 = vmax.f32 %v798_v27, 0.0  ;;  %v1545_v46 = vld [vmem:[#allocation7 + $0x3] ss:$0 sm:$0xff]  ;;  %1844 = vmatpush3.bf16.msra.mxu1 %v1986_v40 }
 0x30c   : > { %1845 = vmatprep.subr.bf16.mxu1 %v1987_v41 }
 0x30d   : > { %v814_v33 = vmax.f32 %v790_v30, 0.0  ;;  %v824_v36 = vpack.c.bf16 %v816_v31, %v815_v34 }
 0x30f   : > { %v823_v35 = vpack.c.bf16 %v814_v33, %v813_v32  ;;  %1846 = vmatpush3.bf16.msra.mxu1 %v1987_v41 }
 0x310   : > { %1847 = vmatprep.subr.bf16.mxu1 %v1988_v42 }
 0x311   : > { %1799 = vmatprep.mubr.bf16.mxu1 %v823_v35 }
 0x312   : > { %1800 = vmatmul.mubr.bf16.gmra.mxu1 %v824_v36 }
 0x313   : > { %1848 = vmatpush3.bf16.msra.mxu1 %v1988_v42 }
 0x314   : > { %1849 = vmatprep.subr.bf16.mxu1 %v1989_v43 }
 0x317   : > { %1850 = vmatpush3.bf16.msra.mxu1 %v1989_v43 }
 0x3ba   : > { %v1789_v45 = vpop.f32.mrf.mxu1 }
 0x3bb   : > { %v941_v51 = vadd.f32 %v1789_v45, %v1545_v46  ;;  %v1554_v45 = vld [vmem:[#allocation7 + $0x4] ss:$0 sm:$0xff] }
 0x3bc   : > { %v932_v47 = vpop.f32.mrf.mxu1 }
 0x3bd   : > { %v933_v48 = vadd.f32 %v1545_v46, %v932_v47 }
 0x3be   : > { %v1790_v49 = vpop.f32.mrf.mxu1 }
 0x3bf   : > { %v944_v50 = vadd.f32 %v1790_v49, %v1545_v46  ;;  %2054 = vtanh.f32 %v933_v48 }
 0x3c0   : > { %v935_v52 = vpop.f32.mrf.mxu1 }
 0x3c1   : > { %v936_v53 = vadd.f32 %v1545_v46, %v935_v52  ;;  %2056 = vtanh.f32 %v944_v50 }
 0x3c2   : > { %v1793_v54 = vpop.f32.mrf.mxu1 }
 0x3c3   : > { %2058 = vtanh.f32 %v936_v53  ;;  %v957_v59 = vadd.f32 %v1793_v54, %v1545_v46 }
 0x3c4   : > { %2060 = vtanh.f32 %v941_v51  ;;  %v948_v55 = vpop.f32.mrf.mxu1 }
 0x3c5   : > { %v949_v56 = vadd.f32 %v1545_v46, %v948_v55 }
 0x3c6   : > { %v1794_v57 = vpop.f32.mrf.mxu1 }
 0x3c7   : > { %v960_v58 = vadd.f32 %v1794_v57, %v1545_v46  ;;  %2062 = vtanh.f32 %v949_v56 }
 0x3c8   : > { %v951_v60 = vpop.f32.mrf.mxu1 }
 0x3c9   : > { %v952_v61 = vadd.f32 %v1545_v46, %v951_v60  ;;  %2064 = vtanh.f32 %v960_v58 }
 0x3ca   : > { %v1797_v62 = vpop.f32.mrf.mxu1 }
 0x3cb   : > { %2066 = vtanh.f32 %v952_v61  ;;  %v973_v6 = vadd.f32 %v1797_v62, %v1545_v46 }
 0x3cc   : > { %2068 = vtanh.f32 %v957_v59  ;;  %v964_v63 = vpop.f32.mrf.mxu1  ;;  %v2055_v1 = vpop.eup %2054 }
 0x3cd   : > { %v965_v0 = vadd.f32 %v1545_v46, %v964_v63 }
 0x3ce   : > { %v1798_v2 = vpop.f32.mrf.mxu1  ;;  %v2057_v3 = vpop.eup %2056 }
 0x3cf   : > { %v976_v4 = vadd.f32 %v1798_v2, %v1545_v46  ;;  %2070 = vtanh.f32 %v965_v0 }
 0x3d0   : > { %v2059_v5 = vpop.eup %2058  ;;  %v967_v7 = vpop.f32.mrf.mxu1 }
 0x3d1   : > { %v2061_v8 = vpop.eup %2060  ;;  %v968_v9 = vadd.f32 %v1545_v46, %v967_v7  ;;  %v1011_v10 = vpack.c.bf16 %v2059_v5, %v2055_v1  ;;  %2072 = vtanh.f32 %v976_v4 }
 0x3d2   : > { %v1801_v11 = vpop.f32.mrf.mxu1  ;;  %v1012_v12 = vpack.c.bf16 %v2057_v3, %v2061_v8 }
 0x3d3   : > { %2074 = vtanh.f32 %v968_v9  ;;  %1819 = vmatprep.mubr.bf16.mxu0 %v1011_v10  ;;  %v989_v20 = vadd.f32 %v1801_v11, %v1545_v46 }
 0x3d4   : > { %2076 = vtanh.f32 %v973_v6  ;;  %v980_v13 = vpop.f32.mrf.mxu1  ;;  %1820 = vmatmul.mubr.bf16.vlgmr.msra.gmra.mxu0 %v1012_v12  ;;  %v2063_v15 = vpop.eup %2062 }
 0x3d5   : > { %v981_v14 = vadd.f32 %v1545_v46, %v980_v13 }
 0x3d6   : > { %v1802_v16 = vpop.f32.mrf.mxu1  ;;  %v2065_v17 = vpop.eup %2064 }
 0x3d7   : > { %v992_v18 = vadd.f32 %v1802_v16, %v1545_v46  ;;  %2078 = vtanh.f32 %v981_v14 }
 0x3d8   : > { %v2067_v19 = vpop.eup %2066  ;;  %v983_v21 = vpop.f32.mrf.mxu1 }
 0x3d9   : > { %v2069_v22 = vpop.eup %2068  ;;  %v984_v23 = vadd.f32 %v1545_v46, %v983_v21  ;;  %v1013_v24 = vpack.c.bf16 %v2067_v19, %v2063_v15  ;;  %2080 = vtanh.f32 %v992_v18 }
 0x3da   : > { %v1014_v25 = vpack.c.bf16 %v2065_v17, %v2069_v22 }
 0x3db   : > { %2082 = vtanh.f32 %v984_v23  ;;  %1823 = vmatprep.mubr.bf16.mxu0 %v1013_v24 }
 0x3dc   : > { %2084 = vtanh.f32 %v989_v20  ;;  %1824 = vmatmul.mubr.bf16.gmra.mxu0 %v1014_v25  ;;  %v2071_v26 = vpop.eup %2070 }
 0x3de   : > { %v2073_v27 = vpop.eup %2072 }
 0x3e0   : > { %v2075_v28 = vpop.eup %2074 }
 0x3e1   : > { %v2077_v29 = vpop.eup %2076  ;;  %v1015_v30 = vpack.c.bf16 %v2075_v28, %v2071_v26 }
 0x3e2   : > { %v1016_v31 = vpack.c.bf16 %v2073_v27, %v2077_v29 }
 0x3e3   : > { %1827 = vmatprep.mubr.bf16.mxu0 %v1015_v30 }
 0x3e4   : > { %1828 = vmatmul.mubr.bf16.gmra.mxu0 %v1016_v31  ;;  %v2079_v32 = vpop.eup %2078 }
 0x3e6   : > { %v2081_v33 = vpop.eup %2080 }
 0x3e8   : > { %v2083_v34 = vpop.eup %2082 }
 0x3e9   : > { %v2085_v35 = vpop.eup %2084  ;;  %v1017_v36 = vpack.c.bf16 %v2083_v34, %v2079_v32 }
 0x3ea   : > { %v1018_v37 = vpack.c.bf16 %v2081_v33, %v2085_v35 }
 0x3eb   : > { %1831 = vmatprep.mubr.bf16.mxu0 %v1017_v36 }
 0x3ec   : > { %1832 = vmatmul.mubr.bf16.gmra.mxu0 %v1018_v37  ;;  %v1563_v37 = vld [vmem:[#allocation7 + $0x5] ss:$0 sm:$0xff] }
 0x494   : > { %v1821_v44 = vpop.f32.mrf.mxu0 }
 0x495   : > { %v1135_v50 = vadd.f32 %v1821_v44, %v1554_v45 }
 0x496   : > { %v1126_v46 = vpop.f32.mrf.mxu0 }
 0x497   : > { %v1127_v47 = vadd.f32 %v1554_v45, %v1126_v46 }
 0x498   : > { %v1822_v48 = vpop.f32.mrf.mxu0 }
 0x499   : > { %v1138_v49 = vadd.f32 %v1822_v48, %v1554_v45  ;;  %2086 = vtanh.f32 %v1127_v47 }
 0x49a   : > { %v1129_v51 = vpop.f32.mrf.mxu0 }
 0x49b   : > { %v1130_v52 = vadd.f32 %v1554_v45, %v1129_v51  ;;  %2088 = vtanh.f32 %v1138_v49 }
 0x49c   : > { %v1825_v53 = vpop.f32.mrf.mxu0 }
 0x49d   : > { %2090 = vtanh.f32 %v1130_v52  ;;  %v1151_v58 = vadd.f32 %v1825_v53, %v1554_v45 }
 0x49e   : > { %2092 = vtanh.f32 %v1135_v50  ;;  %v1142_v54 = vpop.f32.mrf.mxu0 }
 0x49f   : > { %v1143_v55 = vadd.f32 %v1554_v45, %v1142_v54 }
 0x4a0   : > { %v1826_v56 = vpop.f32.mrf.mxu0 }
 0x4a1   : > { %v1154_v57 = vadd.f32 %v1826_v56, %v1554_v45  ;;  %2094 = vtanh.f32 %v1143_v55 }
 0x4a2   : > { %v1145_v59 = vpop.f32.mrf.mxu0 }
 0x4a3   : > { %v1146_v60 = vadd.f32 %v1554_v45, %v1145_v59  ;;  %2096 = vtanh.f32 %v1154_v57 }
 0x4a4   : > { %v1829_v61 = vpop.f32.mrf.mxu0 }
 0x4a5   : > { %2098 = vtanh.f32 %v1146_v60  ;;  %v1167_v5 = vadd.f32 %v1829_v61, %v1554_v45 }
 0x4a6   : > { %2100 = vtanh.f32 %v1151_v58  ;;  %v1158_v62 = vpop.f32.mrf.mxu0  ;;  %v2087_v0 = vpop.eup %2086 }
 0x4a7   : > { %v1159_v63 = vadd.f32 %v1554_v45, %v1158_v62 }
 0x4a8   : > { %v1830_v1 = vpop.f32.mrf.mxu0  ;;  %v2089_v2 = vpop.eup %2088 }
 0x4a9   : > { %v1170_v3 = vadd.f32 %v1830_v1, %v1554_v45  ;;  %2102 = vtanh.f32 %v1159_v63 }
 0x4aa   : > { %v2091_v4 = vpop.eup %2090  ;;  %v1161_v6 = vpop.f32.mrf.mxu0 }
 0x4ab   : > { %v2093_v7 = vpop.eup %2092  ;;  %v1162_v8 = vadd.f32 %v1554_v45, %v1161_v6  ;;  %v1205_v9 = vpack.c.bf16 %v2091_v4, %v2087_v0  ;;  %2104 = vtanh.f32 %v1170_v3 }
 0x4ac   : > { %v1833_v10 = vpop.f32.mrf.mxu0  ;;  %v1206_v11 = vpack.c.bf16 %v2089_v2, %v2093_v7 }
 0x4ad   : > { %2106 = vtanh.f32 %v1162_v8  ;;  %1851 = vmatprep.mubr.bf16.mxu1 %v1205_v9  ;;  %v1183_v19 = vadd.f32 %v1833_v10, %v1554_v45 }
 0x4ae   : > { %2108 = vtanh.f32 %v1167_v5  ;;  %v1174_v12 = vpop.f32.mrf.mxu0  ;;  %1852 = vmatmul.mubr.bf16.vlgmr.msra.gmra.mxu1 %v1206_v11  ;;  %v2095_v14 = vpop.eup %2094 }
 0x4af   : > { %v1175_v13 = vadd.f32 %v1554_v45, %v1174_v12 }
 0x4b0   : > { %v1834_v15 = vpop.f32.mrf.mxu0  ;;  %v2097_v16 = vpop.eup %2096 }
 0x4b1   : > { %v1186_v17 = vadd.f32 %v1834_v15, %v1554_v45  ;;  %2110 = vtanh.f32 %v1175_v13 }
 0x4b2   : > { %v2099_v18 = vpop.eup %2098  ;;  %v1177_v20 = vpop.f32.mrf.mxu0 }
 0x4b3   : > { %v2101_v21 = vpop.eup %2100  ;;  %v1178_v22 = vadd.f32 %v1554_v45, %v1177_v20  ;;  %v1207_v23 = vpack.c.bf16 %v2099_v18, %v2095_v14  ;;  %2112 = vtanh.f32 %v1186_v17 }
 0x4b4   : > { %v1208_v24 = vpack.c.bf16 %v2097_v16, %v2101_v21 }
 0x4b5   : > { %2114 = vtanh.f32 %v1178_v22  ;;  %1855 = vmatprep.mubr.bf16.mxu1 %v1207_v23 }
 0x4b6   : > { %2116 = vtanh.f32 %v1183_v19  ;;  %1856 = vmatmul.mubr.bf16.gmra.mxu1 %v1208_v24  ;;  %v2103_v25 = vpop.eup %2102 }
 0x4b8   : > { %v2105_v26 = vpop.eup %2104 }
 0x4ba   : > { %v2107_v27 = vpop.eup %2106 }
 0x4bb   : > { %v2109_v28 = vpop.eup %2108  ;;  %v1209_v29 = vpack.c.bf16 %v2107_v27, %v2103_v25 }
 0x4bc   : > { %v1210_v30 = vpack.c.bf16 %v2105_v26, %v2109_v28 }
 0x4bd   : > { %1859 = vmatprep.mubr.bf16.mxu1 %v1209_v29 }
 0x4be   : > { %1860 = vmatmul.mubr.bf16.gmra.mxu1 %v1210_v30  ;;  %v2111_v31 = vpop.eup %2110 }
 0x4c0   : > { %v2113_v32 = vpop.eup %2112 }
 0x4c2   : > { %v2115_v33 = vpop.eup %2114 }
 0x4c3   : > { %v2117_v34 = vpop.eup %2116  ;;  %v1211_v35 = vpack.c.bf16 %v2115_v33, %v2111_v31 }
 0x4c4   : > { %v1212_v36 = vpack.c.bf16 %v2113_v32, %v2117_v34 }
 0x4c5   : > { %1863 = vmatprep.mubr.bf16.mxu1 %v1211_v35 }
 0x4c6   : > { %1864 = vmatmul.mubr.bf16.gmra.mxu1 %v1212_v36 }
 0x56e   : > { %v1853_v38 = vpop.f32.mrf.mxu1 }
 0x56f   : > { %v1329_v39 = vadd.f32 %v1853_v38, %v1563_v37 }
 0x570   : > { %v1320_v40 = vpop.f32.mrf.mxu1 }
 0x571   : > { %1385 = vst [vmem:[%s2461_s18 + $0x10] sm:$0xff] %v1329_v39  ;;  %v1321_v41 = vadd.f32 %v1563_v37, %v1320_v40 }
 0x572   : > { %v1854_v42 = vpop.f32.mrf.mxu1 }
 0x573   : > { %1383 = vst [vmem:[%s2461_s18] sm:$0xff] %v1321_v41  ;;  %v1332_v43 = vadd.f32 %v1854_v42, %v1563_v37 }
 0x574   : > { %v1323_v44 = vpop.f32.mrf.mxu1 }
 0x575   : > { %1386 = vst [vmem:[%s2461_s18 + $0x18] sm:$0xff] %v1332_v43  ;;  %v1324_v45 = vadd.f32 %v1563_v37, %v1323_v44 }
 0x576   : > { %v1857_v46 = vpop.f32.mrf.mxu1 }
 0x577   : > { %1384 = vst [vmem:[%s2461_s18 + $0x8] sm:$0xff] %v1324_v45  ;;  %v1345_v47 = vadd.f32 %v1857_v46, %v1563_v37 }
 0x578   : > { %v1336_v48 = vpop.f32.mrf.mxu1 }
 0x579   : > { %1389 = vst [vmem:[%s2461_s18 + $0x30] sm:$0xff] %v1345_v47  ;;  %v1337_v49 = vadd.f32 %v1563_v37, %v1336_v48 }
 0x57a   : > { %v1858_v50 = vpop.f32.mrf.mxu1 }
 0x57b   : > { %1387 = vst [vmem:[%s2461_s18 + $0x20] sm:$0xff] %v1337_v49  ;;  %v1348_v51 = vadd.f32 %v1858_v50, %v1563_v37 }
 0x57c   : > { %v1339_v52 = vpop.f32.mrf.mxu1 }
 0x57d   : > { %1390 = vst [vmem:[%s2461_s18 + $0x38] sm:$0xff] %v1348_v51  ;;  %v1340_v53 = vadd.f32 %v1563_v37, %v1339_v52 }
 0x57e   : > { %v1861_v54 = vpop.f32.mrf.mxu1 }
 0x57f   : > { %1388 = vst [vmem:[%s2461_s18 + $0x28] sm:$0xff] %v1340_v53  ;;  %v1361_v55 = vadd.f32 %v1861_v54, %v1563_v37 }
 0x580   : > { %v1352_v56 = vpop.f32.mrf.mxu1 }
 0x581   : > { %1393 = vst [vmem:[%s2461_s18 + $0x50] sm:$0xff] %v1361_v55  ;;  %v1353_v57 = vadd.f32 %v1563_v37, %v1352_v56 }
 0x582   : > { %v1862_v58 = vpop.f32.mrf.mxu1 }
 0x583   : > { %1391 = vst [vmem:[%s2461_s18 + $0x40] sm:$0xff] %v1353_v57  ;;  %v1364_v59 = vadd.f32 %v1862_v58, %v1563_v37 }
 0x584   : > { %v1355_v60 = vpop.f32.mrf.mxu1 }
 0x585   : > { %1394 = vst [vmem:[%s2461_s18 + $0x58] sm:$0xff] %v1364_v59  ;;  %v1356_v61 = vadd.f32 %v1563_v37, %v1355_v60 }
 0x586   : > { %v1865_v62 = vpop.f32.mrf.mxu1 }
 0x587   : > { %1392 = vst [vmem:[%s2461_s18 + $0x48] sm:$0xff] %v1356_v61  ;;  %v1377_v63 = vadd.f32 %v1865_v62, %v1563_v37 }
 0x588   : > { %v1368_v0 = vpop.f32.mrf.mxu1 }
 0x589   : > { %1397 = vst [vmem:[%s2461_s18 + $0x70] sm:$0xff] %v1377_v63  ;;  %v1369_v1 = vadd.f32 %v1563_v37, %v1368_v0 }
 0x58a   : > { %v1866_v2 = vpop.f32.mrf.mxu1 }
 0x58b   : > { %1395 = vst [vmem:[%s2461_s18 + $0x60] sm:$0xff] %v1369_v1  ;;  %v1380_v3 = vadd.f32 %v1866_v2, %v1563_v37 }
 0x58c   : > { %v1371_v4 = vpop.f32.mrf.mxu1 }
 0x58d   : > { %1398 = vst [vmem:[%s2461_s18 + $0x78] sm:$0xff] %v1380_v3  ;;  %v1372_v5 = vadd.f32 %v1563_v37, %v1371_v4 }
 0x58f   : > { %1396 = vst [vmem:[%s2461_s18 + $0x68] sm:$0xff] %v1372_v5 }
 0x590   : > { %2211 = shalt.err (!%p2208_p9)
}
 0x591   : > { %s2212_s24 = scalar_lea.hbm %s2482_s4, 2048  ;;  %s2216_s28 = scalar_lea.hbm %s2532_s3, 4096 }
 0x592   : > { %p2213_p13 = scmp.ne.s32.totalorder %s2482_s4, %s2212_s24  ;;  %p2217_p4 = scmp.lt.s32.totalorder %s2482_s4, %s2532_s3 }
 0x593   : > { %p2218_p8 = scmp.lt.s32.totalorder %s2216_s28, %s2212_s24 }
 0x594   : > { %p2214_p5 = pnand %p2213_p13, %p2548_p10 }
 0x595   : > { %p2219_p7 = por %p2218_p8, %p2217_p4 }
 0x596   : > { %p2215_p0 = pneg %p2214_p5 }
 0x598   : > { %p2220_p11 = pnand %p2219_p7, %p2215_p0 }
 0x59a   : > { %2223 = shalt.err (!%p2220_p11)
}
 0x59b   : > { %s2278_s8 = smov 128   ;;  %s2279_s18 = smov 8  }
 0x59c   : > { %1877 = dma.vmem_to_hbm [thread:$0]  (%p2548_p10), %s2484_s27, 2048, %s2482_s4, %s1400_s10, %s2278_s8, %s2278_s8, %s2279_s18  }
 0x59d PF: > { %s1428_s20 = sand.u32 1, %s2254_s12   ;;  %p2549_p1 = scmp.ne.s32.totalorder %s2538_s19, 0 }
 0x59e   : > { %p2550_p2 = scmp.ge.s32.totalorder %s2266_s15, 2  ;;  %s1429_s29 = scalar_lea.sflag [#allocation4], %s1428_s20 }
 0x5a0   : > { %p1891_p6 = pnand %p2550_p2, %p2549_p1 }
 0x5a2   : > { %p1892_p12 = pneg %p1891_p6 }
 0x5a4   : > { %2249 = dma.done.wait (%p1892_p12), %s1429_s29, 2048  }
 0x5a5   : > { %2251 = vsyncadd (%p1892_p12), %s1429_s29, 4294965248  ;;  %p17_p3 = scmp.ge.s32.totalorder %s2372_s9, 4   ;;  %s2551_s12 = smov %s2258_s13 }
 0x5a6   : > { %s2552_s13 = smov %s2262_s14  ;;  %s2553_s14 = smov %s2381_s17 }
 0x5a7   : > { %s2554_s15 = smov %s2372_s9  ;;  %19 = sbr.rel (!%p17_p3) target bundleno = 6 (0x6), region = 95 }
 0x5ac   :  { %1434 = vsyncpa [#allocation3], 1 }
 0x5ad   :  { %1436 = vsyncpa [#allocation3 + $0x1], 1 }
 0x5ae   :  { %1437 = vsyncpa [#allocation6], 1 }
 0x5af   :  { %1438 = vsyncpa [#allocation4], 1 }
 0x5b0   :  { %1440 = vsyncpa [#allocation4 + $0x1], 1 }

</bundles_post_ra>
